<compile_context>
chip_gen: v7x
topology: tpu7x:2x2x1
jax: 0.10.0
libtpu: 0.0.40
codegen_flags: <defaults>
</compile_context>

<pallas_src>
import math
import jax
import jax.numpy as jnp
from jax.experimental import pallas as pl
from jax.experimental.pallas import tpu as pltpu

# Fixed-embedding table layout (embed_type='fixed', freq='h'):
#   rows [ 0..12]  month   (month_size   = 13)
#   rows [13..44]  day     (day_size     = 32)
#   rows [45..51]  weekday (weekday_size = 7)
#   rows [52..75]  hour    (hour_size    = 24)
_MONTH_OFF, _DAY_OFF, _WEEKDAY_OFF, _HOUR_OFF = 0, 13, 45, 52
_OFFSETS = (_MONTH_OFF, _DAY_OFF, _WEEKDAY_OFF, _HOUR_OFF)
_TABLE_ROWS = 13 + 32 + 7 + 24   # 76


def _embedding_kernel(x_ref, xm_ref, w_ref, tab_ref, o_ref):
    # x_ref:   (BB, L, C_in)  raw values
    # xm_ref:  (BB, L, 4)     int32, pre-offset table row ids
    #                         [month, 13+day, 45+weekday, 52+hour]
    # w_ref:   (3, C_in, D)   conv taps (tap-major), float32
    # tab_ref: (76, D)        concatenated fixed sin/cos tables, float32
    # o_ref:   (BB, L, D)     value_embedding(x) + temporal_embedding(x_mark)
    BB, L, _ = x_ref.shape
    T = tab_ref.shape[0]

    # Block-invariant: load once per grid step, not once per batch element.
    w0 = w_ref[0]
    w1 = w_ref[1]
    w2 = w_ref[2]
    tab = tab_ref[...]
    col = jax.lax.broadcasted_iota(jnp.int32, (L, T), 1)

    for i in range(BB):  # static unroll over batch elements packed per step
        x = x_ref[i].astype(jnp.float32)            # (L, C_in)

        # Circular conv, kernel_size=3, padding=1, padding_mode='circular':
        #   out[l] = x[l-1] @ w[0] + x[l] @ w[1] + x[l+1] @ w[2]
        # pltpu.roll follows jnp.roll semantics; shift L-1 == shift -1
        # (circular), and the rotation runs on the XLU (off the VALU /
        # load-store path, which has slack in this memory-bound kernel).
        x_prev = pltpu.roll(x, 1, 0)                # row l -> x[l-1]
        x_next = pltpu.roll(x, L - 1, 0)            # row l -> x[l+1]
        val = (jnp.dot(x_prev, w0, preferred_element_type=jnp.float32)
               + jnp.dot(x,      w1, preferred_element_type=jnp.float32)
               + jnp.dot(x_next, w2, preferred_element_type=jnp.float32))

        # Temporal embedding fused in-kernel: the four table gathers become one
        # one-hot [L, 76] @ [76, D] MXU matmul.  The four sub-tables occupy
        # disjoint row ranges and the ids are pre-offset, so the one-hot is a
        # single OR of four compares (exactly four 1.0s per row).
        ids = xm_ref[i]                             # (L, 4) int32
        onehot = ((col == ids[:, 0:1])
                  | (col == ids[:, 1:2])
                  | (col == ids[:, 2:3])
                  | (col == ids[:, 3:4])).astype(jnp.float32)
        temp = jnp.dot(onehot, tab, preferred_element_type=jnp.float32)

        # Single cast at the store (f32 accumulation throughout).
        o_ref[i] = (val + temp).astype(o_ref.dtype)


def _fixed_table(c_in, d_model):
    """Sin/cos FixedEmbedding table, identical to the PyTorch buffer."""
    pos = jnp.arange(c_in, dtype=jnp.float32)[:, None]
    div = jnp.exp(jnp.arange(0, d_model, 2, dtype=jnp.float32)
                  * (-math.log(10000.0) / d_model))
    tab = jnp.zeros((c_in, d_model), jnp.float32)
    tab = tab.at[:, 0::2].set(jnp.sin(pos * div))
    tab = tab.at[:, 1::2].set(jnp.cos(pos * div))
    return tab


def make_temporal_table(d_model):
    """Concatenated fixed tables: [month; day; weekday; hour] -> (76, D)."""
    return jnp.concatenate([_fixed_table(13, d_model),   # month
                            _fixed_table(32, d_model),   # day
                            _fixed_table(7,  d_model),   # weekday
                            _fixed_table(24, d_model)],  # hour
                           axis=0)


def _pick_batch_block(batch, seq_len, c_in, d_model, *,
                      target_rows=1024, vmem_budget_bytes=12 * 1024 * 1024):
    """Largest divisor of `batch` whose block covers <= ~target_rows output rows
    and fits a conservative VMEM budget (double-buffered in + out), while
    keeping >= 2 grid steps so both TensorCores (v7x megacore) get work."""
    best = 1
    for bb in range(1, batch + 1):
        if batch % bb != 0:
            continue
        rows = bb * seq_len
        if rows > max(target_rows, seq_len):
            break
        blk_bytes = 2 * rows * (c_in + 4 + d_model) * 4   # double-buffered in+out
        if blk_bytes > vmem_budget_bytes and bb > 1:
            break
        if batch // bb >= 2 or batch == 1:
            best = bb
    return best


def data_embedding_wo_pos(x, x_mark, conv_w, temporal_table, *, batch_block=None):
    """x: [B, L, C_in] float.  x_mark: [B, L, >=4] int with columns
    [month, day, weekday, hour] (embed_type='fixed', freq='h'), or None.
    conv_w: [3, C_in, D] tap-major Conv1d weight.  temporal_table: [76, D] f32."""
    B, L, C = x.shape
    D = conv_w.shape[-1]

    if x_mark is None:
        # value_embedding only: zero table + index-0 rows contribute exactly 0.
        xm = jnp.zeros((B, L, 4), jnp.int32)
        table = jnp.zeros((_TABLE_ROWS, D), jnp.float32)
    else:
        offs = jnp.asarray(_OFFSETS, jnp.int32)
        xm = x_mark[..., :4].astype(jnp.int32) + offs    # pre-offset table rows
        table = temporal_table.astype(jnp.float32)

    if batch_block is None:
        batch_block = _pick_batch_block(B, L, C, D)
    assert B % batch_block == 0

    cost = pl.CostEstimate(
        flops=2 * B * L * D * (3 * C + _TABLE_ROWS),
        transcendentals=0,
        bytes_accessed=(x.size * x.dtype.itemsize + xm.size * 4
                        + conv_w.size * 4 + table.size * 4
                        + B * L * D * x.dtype.itemsize),
    )

    out = pl.pallas_call(
        _embedding_kernel,
        out_shape=jax.ShapeDtypeStruct((B, L, D), x.dtype),
        grid_spec=pltpu.PrefetchScalarGridSpec(
            num_scalar_prefetch=0,
            grid=(B // batch_block,),
            in_specs=[
                pl.BlockSpec((batch_block, L, C), lambda b: (b, 0, 0)),
                pl.BlockSpec((batch_block, L, 4), lambda b: (b, 0, 0)),
                pl.BlockSpec((3, C, D),           lambda b: (0, 0, 0)),
                pl.BlockSpec((_TABLE_ROWS, D),    lambda b: (0, 0)),
            ],
            out_specs=pl.BlockSpec((batch_block, L, D), lambda b: (b, 0, 0)),
        ),
        compiler_params=pltpu.CompilerParams(
            dimension_semantics=("parallel",)),
        cost_estimate=cost,
    )(x, xm, conv_w.astype(jnp.float32), table)

    # Dropout(p=0.1): identity in eval mode (inference semantics).
    # TODO(synk): training-mode dropout (pltpu.prng_seed/prng_random_bits) not implemented.
    return out


if __name__ == "__main__":
    B, L, C_in, D = 2, 8, 4, 32
    # NOTE: deployed configs should use D as a multiple of 128 for lane-dense
    # stores; the demo keeps the module's small example width.

    key = jax.random.PRNGKey(0)
    kx, kw, km, kd, kwd, kh = jax.random.split(key, 6)

    # Inputs
    x = jax.random.normal(kx, (B, L, C_in), jnp.float32)
    x_mark = jnp.stack(
        [jax.random.randint(km,  (B, L), 0, 13),   # month   (month_size=13)
         jax.random.randint(kd,  (B, L), 0, 32),   # day     (day_size=32)
         jax.random.randint(kwd, (B, L), 0, 7),    # weekday (weekday_size=7)
         jax.random.randint(kh,  (B, L), 0, 24)],  # hour    (hour_size=24)
        axis=-1).astype(jnp.int32)                 # [B, L, 4]

    # TokenEmbedding Conv1d weight: kaiming_normal_(fan_in, leaky_relu) ->
    # std = sqrt(2) / sqrt(C_in * 3).  Stored tap-major as [3, C_in, D].
    std = math.sqrt(2.0) / math.sqrt(C_in * 3)
    conv_w = jax.random.normal(kw, (3, C_in, D), jnp.float32) * std

    table = make_temporal_table(D)                 # (76, D) fixed sin/cos buffer
    # TODO(synk): minute_embed only exists for freq='t'; freq='h' is modeled here.

    out = data_embedding_wo_pos(x, x_mark, conv_w, table)
    jax.block_until_ready(out)
    assert out.shape == (B, L, D)

    # Pure-JAX reference (circular conv via jnp.roll + table gathers).
    hp = jax.lax.Precision.HIGHEST
    ref = (jnp.einsum('blc,cd->bld', jnp.roll(x, 1, axis=1),   conv_w[0], precision=hp)
           + jnp.einsum('blc,cd->bld', x,                       conv_w[1], precision=hp)
           + jnp.einsum('blc,cd->bld', jnp.roll(x, -1, axis=1), conv_w[2], precision=hp))
    ref = ref + (jnp.take(table, x_mark[..., 0] + _MONTH_OFF,   axis=0)
                 + jnp.take(table, x_mark[..., 1] + _DAY_OFF,     axis=0)
                 + jnp.take(table, x_mark[..., 2] + _WEEKDAY_OFF, axis=0)
                 + jnp.take(table, x_mark[..., 3] + _HOUR_OFF,    axis=0))
    assert jnp.allclose(out, ref, atol=3e-2, rtol=3e-2), "kernel mismatch vs reference"

    print("KERNEL_OK")
</pallas_src>

<mosaic_0001>
module attributes {stable_mosaic.version = 11 : i64} {
  func.func @_embedding_kernel(%arg0: i32, %arg1: memref<1x8x4xf32, #tpu.memory_space<vmem>>, %arg2: memref<1x8x4xi32, #tpu.memory_space<vmem>>, %arg3: memref<3x4x32xf32, #tpu.memory_space<vmem>>, %arg4: memref<76x32xf32, #tpu.memory_space<vmem>>, %arg5: memref<1x8x32xf32, #tpu.memory_space<vmem>>) attributes {dimension_semantics = [#tpu.dimension_semantics<parallel>], iteration_bounds = array<i64: 2>, scalar_prefetch = 0 : i64, scratch_operands = 0 : i64, tpu.core_type = #tpu.core_type<tc>, window_params = [{transform_indices = @transform_0, window_bounds = array<i64: 1, 8, 4>}, {transform_indices = @transform_1, window_bounds = array<i64: 1, 8, 4>}, {pipeline_mode = #tpu.pipeline_mode<synchronous>, transform_indices = @transform_2, window_bounds = array<i64: 3, 4, 32>}, {pipeline_mode = #tpu.pipeline_mode<synchronous>, transform_indices = @transform_3, window_bounds = array<i64: 76, 32>}, {transform_indices = @transform_4, window_bounds = array<i64: 1, 8, 32>}]} {
    %c0 = arith.constant 0 : index
    %c0_0 = arith.constant 0 : index
    %c0_1 = arith.constant 0 : index
    %0 = vector.load %arg3[%c0, %c0_0, %c0_1] : memref<3x4x32xf32, #tpu.memory_space<vmem>>, vector<1x4x32xf32>
    %1 = vector.shape_cast %0 : vector<1x4x32xf32> to vector<4x32xf32>
    %c1 = arith.constant 1 : index
    %c0_2 = arith.constant 0 : index
    %c0_3 = arith.constant 0 : index
    %2 = vector.load %arg3[%c1, %c0_2, %c0_3] : memref<3x4x32xf32, #tpu.memory_space<vmem>>, vector<1x4x32xf32>
    %3 = vector.shape_cast %2 : vector<1x4x32xf32> to vector<4x32xf32>
    %c2 = arith.constant 2 : index
    %c0_4 = arith.constant 0 : index
    %c0_5 = arith.constant 0 : index
    %4 = vector.load %arg3[%c2, %c0_4, %c0_5] : memref<3x4x32xf32, #tpu.memory_space<vmem>>, vector<1x4x32xf32>
    %5 = vector.shape_cast %4 : vector<1x4x32xf32> to vector<4x32xf32>
    %c0_6 = arith.constant 0 : index
    %c0_7 = arith.constant 0 : index
    %6 = vector.load %arg4[%c0_6, %c0_7] : memref<76x32xf32, #tpu.memory_space<vmem>>, vector<76x32xf32>
    %7 = tpu.iota {dimensions = array<i32: 1>} : vector<8x76xi32>
    %c0_8 = arith.constant 0 : index
    %c0_9 = arith.constant 0 : index
    %c0_10 = arith.constant 0 : index
    %8 = vector.load %arg1[%c0_8, %c0_9, %c0_10] : memref<1x8x4xf32, #tpu.memory_space<vmem>>, vector<1x8x4xf32>
    %9 = vector.shape_cast %8 : vector<1x8x4xf32> to vector<8x4xf32>
    %c1_i32 = arith.constant 1 : i32
    %10 = tpu.dynamic_rotate %9 by %c1_i32 dim 0 : vector<8x4xf32>, i32 -> vector<8x4xf32>
    %c7_i32 = arith.constant 7 : i32
    %11 = tpu.dynamic_rotate %9 by %c7_i32 dim 0 : vector<8x4xf32>, i32 -> vector<8x4xf32>
    %cst = arith.constant dense<0.000000e+00> : vector<8x32xf32>
    %12 = tpu.matmul %10, %1, %cst {dimension_numbers = #tpu.dot_dimension_numbers<[1], [0], [0], [1], [0, 0, 1, 1], [], []>} : vector<8x4xf32>, vector<4x32xf32>, vector<8x32xf32> -> vector<8x32xf32>
    %cst_11 = arith.constant dense<0.000000e+00> : vector<8x32xf32>
    %13 = tpu.matmul %9, %3, %cst_11 {dimension_numbers = #tpu.dot_dimension_numbers<[1], [0], [0], [1], [0, 0, 1, 1], [], []>} : vector<8x4xf32>, vector<4x32xf32>, vector<8x32xf32> -> vector<8x32xf32>
    %14 = arith.addf %12, %13 : vector<8x32xf32>
    %cst_12 = arith.constant dense<0.000000e+00> : vector<8x32xf32>
    %15 = tpu.matmul %11, %5, %cst_12 {dimension_numbers = #tpu.dot_dimension_numbers<[1], [0], [0], [1], [0, 0, 1, 1], [], []>} : vector<8x4xf32>, vector<4x32xf32>, vector<8x32xf32> -> vector<8x32xf32>
    %16 = arith.addf %14, %15 : vector<8x32xf32>
    %c0_13 = arith.constant 0 : index
    %c0_14 = arith.constant 0 : index
    %c0_15 = arith.constant 0 : index
    %17 = vector.load %arg2[%c0_13, %c0_14, %c0_15] : memref<1x8x4xi32, #tpu.memory_space<vmem>>, vector<1x8x4xi32>
    %18 = vector.shape_cast %17 : vector<1x8x4xi32> to vector<8x4xi32>
    %19 = vector.extract_strided_slice %18 {offsets = [0, 0], sizes = [8, 1], strides = [1, 1]} : vector<8x4xi32> to vector<8x1xi32>
    %20 = vector.broadcast %19 : vector<8x1xi32> to vector<8x76xi32>
    %21 = arith.cmpi eq, %7, %20 : vector<8x76xi32>
    %22 = vector.extract_strided_slice %18 {offsets = [0, 1], sizes = [8, 1], strides = [1, 1]} : vector<8x4xi32> to vector<8x1xi32>
    %23 = vector.broadcast %22 : vector<8x1xi32> to vector<8x76xi32>
    %24 = arith.cmpi eq, %7, %23 : vector<8x76xi32>
    %25 = arith.ori %21, %24 : vector<8x76xi1>
    %26 = vector.extract_strided_slice %18 {offsets = [0, 2], sizes = [8, 1], strides = [1, 1]} : vector<8x4xi32> to vector<8x1xi32>
    %27 = vector.broadcast %26 : vector<8x1xi32> to vector<8x76xi32>
    %28 = arith.cmpi eq, %7, %27 : vector<8x76xi32>
    %29 = arith.ori %25, %28 : vector<8x76xi1>
    %30 = vector.extract_strided_slice %18 {offsets = [0, 3], sizes = [8, 1], strides = [1, 1]} : vector<8x4xi32> to vector<8x1xi32>
    %31 = vector.broadcast %30 : vector<8x1xi32> to vector<8x76xi32>
    %32 = arith.cmpi eq, %7, %31 : vector<8x76xi32>
    %33 = arith.ori %29, %32 : vector<8x76xi1>
    %34 = arith.extui %33 : vector<8x76xi1> to vector<8x76xi32>
    %35 = arith.sitofp %34 : vector<8x76xi32> to vector<8x76xf32>
    %cst_16 = arith.constant dense<0.000000e+00> : vector<8x32xf32>
    %36 = tpu.matmul %35, %6, %cst_16 {dimension_numbers = #tpu.dot_dimension_numbers<[1], [0], [0], [1], [0, 0, 1, 1], [], []>} : vector<8x76xf32>, vector<76x32xf32>, vector<8x32xf32> -> vector<8x32xf32>
    %37 = arith.addf %16, %36 : vector<8x32xf32>
    %c0_17 = arith.constant 0 : index
    %c0_18 = arith.constant 0 : index
    %c0_19 = arith.constant 0 : index
    %38 = vector.load %arg5[%c0_17, %c0_18, %c0_19] : memref<1x8x32xf32, #tpu.memory_space<vmem>>, vector<1x8x32xf32>
    %39 = vector.shape_cast %38 : vector<1x8x32xf32> to vector<8x32xf32>
    %40 = vector.shape_cast %37 : vector<8x32xf32> to vector<1x8x32xf32>
    tpu.vector_store %arg5[%c0_17, %c0_18, %c0_19], %40 {strides = array<i32>} : memref<1x8x32xf32, #tpu.memory_space<vmem>>, vector<1x8x32xf32>,
    return
  }
  func.func @transform_0(%arg0: i32) -> (i32, i32, i32) {
    %c0_i32 = arith.constant 0 : i32
    %c0_i32_0 = arith.constant 0 : i32
    %c0_i32_1 = arith.constant 0 : i32
    return %arg0, %c0_i32, %c0_i32_0 : i32, i32, i32
  }
  func.func @transform_1(%arg0: i32) -> (i32, i32, i32) {
    %c0_i32 = arith.constant 0 : i32
    %c0_i32_0 = arith.constant 0 : i32
    %c0_i32_1 = arith.constant 0 : i32
    return %arg0, %c0_i32, %c0_i32_0 : i32, i32, i32
  }
  func.func @transform_2(%arg0: i32) -> (i32, i32, i32) {
    %c0_i32 = arith.constant 0 : i32
    %c0_i32_0 = arith.constant 0 : i32
    %c0_i32_1 = arith.constant 0 : i32
    %c0_i32_2 = arith.constant 0 : i32
    return %c0_i32, %c0_i32_0, %c0_i32_1 : i32, i32, i32
  }
  func.func @transform_3(%arg0: i32) -> (i32, i32) {
    %c0_i32 = arith.constant 0 : i32
    %c0_i32_0 = arith.constant 0 : i32
    %c0_i32_1 = arith.constant 0 : i32
    return %c0_i32, %c0_i32_0 : i32, i32
  }
  func.func @transform_4(%arg0: i32) -> (i32, i32, i32) {
    %c0_i32 = arith.constant 0 : i32
    %c0_i32_0 = arith.constant 0 : i32
    %c0_i32_1 = arith.constant 0 : i32
    return %arg0, %c0_i32, %c0_i32_0 : i32, i32, i32
  }
}

</mosaic_0001>

<bundles_post_ra>
// kernel: tpu_custom_call.1
= control target key start
LH: loop header
LB: loop body
LE: loop exit
PB: predicated region body
PF: predicated region fallthrough
CT: control target
= control target key end

     0   :  { %9 = vsyncpa [#allocation3], 0  ;;  %s1057_s0 = inlined_call_operand.vmem [shape: f32[2,8,4], index: 0, kind: input, shape index: {}]   ;;  %s1058_s1 = inlined_call_operand.vmem [shape: s32[2,8,4], index: 1, kind: input, shape index: {}]   ;;  %s1059_s2 = inlined_call_operand.vmem [shape: f32[3,4,32], index: 2, kind: input, shape index: {}]   ;;  %s1060_s3 = inlined_call_operand.vmem [shape: f32[76,32], index: 3, kind: input, shape index: {}]   ;;  %s1061_s4 = inlined_call_operand.hbm [shape: f32[2,8,32], index: 4, kind: output, shape index: {}]  }
   0x1   :  { %11 = vsyncpa [#allocation3 + $0x1], 0  ;;  %s896_s15 = smov 0   ;;  %s898_s16 = smov 0  }
   0x2   :  { %s900_s17 = smov 0   ;;  %s902_s18 = smov 0  }
   0x3 LB: > { %s917_s19 = sadd.s32 4294967295, %s860_s18   ;;  %s648_s20 = sadd.s32 4294967294, %s860_s18   ;;  %s860_s18 = sphi %s902_s18, %s1067_s18   ;;  %s856_s17 = sphi %s900_s17, %s1066_s17   ;;  %s852_s16 = sphi %s898_s16, %s1065_s16   ;;  %s848_s15 = sphi %s896_s15, %s1064_s15  }
   0x4   : > { %s921_s21 = sadd.s32 1, %s860_s18   ;;  %s118_s22 = sadd.s32 1, %s856_s17 }
   0x5   : > { %s115_s23 = ssub.s32 %s860_s18, %s921_s21  ;;  %p128_p0 = scmp.ne.s32.totalorder %s856_s17, %s852_s16 }
   0x6   : > { %p116_p1 = scmp.eq.s32.totalorder %s115_s23, 0  ;;  %p129_p2 = scmp.eq.s32.totalorder %s917_s19, 1 }
   0x7   : > { %p134_p3 = scmp.ne.s32.totalorder %s852_s16, %s848_s15  ;;  %p135_p4 = scmp.eq.s32.totalorder %s648_s20, 1 }
   0x8   : > { %s932_s24 = scalar_select %p116_p1, %s856_s17, %s118_s22  }
   0x9   : > { %p934_p5 = por %p129_p2, %p128_p0  ;;  %p938_p6 = por %p135_p4, %p134_p3 }
   0xa   : > { %p651_p7 = scmp.ge.s32.totalorder %s860_s18, 1  ;;  %p173_p8 = scmp.lt.s32.totalorder %s860_s18, 3 }
   0xc   : > { %p174_p9 = pnand %p651_p7, %p173_p8 }
   0xd   : > { %p202_p10 = scmp.lt.s32.totalorder (!%p174_p9), %s917_s19, 1  ;;  %v215_v0 = vld [vmem:[%s1060_s3] sm:$0xff] (!%p174_p9)  ;;  %v862_v1 = vmov (!%p174_p9), 0   ;;  %v863_v2 = vmov (!%p174_p9), 2   ;;  %vm234_vm0 = vcmask (!%p174_p9), 1043456   ;;  %v864_v4 = vmov (!%p174_p9), 0.0  }
   0xe   : > { %177 = sbr.rel (%p174_p9) target bundleno = 392 (0x188), region = 36  ;;  %793 = vset.pattern.permute.xlu0 (!%p174_p9), %v862_v1  ;;  %795 = vset.pattern.permute.xlu1 (!%p174_p9), %v863_v2  ;;  %v655_v3 = vld [vmem:[%s1059_s2 + $0x4] sm:$0xf] (!%p174_p9)  ;;  %vm865_vm1 = vmmov (!%p174_p9), 0   ;;  %v216_v5 = vld [vmem:[%s1060_s3 + $0x8] sm:$0xff] (!%p174_p9)  ;;  %v866_v6 = vmov (!%p174_p9), 0.0|0.0   ;;  %v225_v28 = vlaneseq (!%p174_p9) }
   0xf   : > { %687 = vmatprep.subr.mxu0 (!%p174_p9), %v864_v4  ;;  %689 = vmatprep.mubr.msk.f32.mxu0 (!%p174_p9), %vm865_vm1, %v864_v4  ;;  %v726_v7 = vpack.c.bf16 (!%p174_p9), %v216_v5, %v215_v0  ;;  %v217_v8 = vld [vmem:[%s1060_s3 + $0x10] sm:$0xff] (!%p174_p9)  ;;  %v218_v9 = vld [vmem:[%s1060_s3 + $0x18] sm:$0xff] (!%p174_p9)  ;;  %vm230_vm2 = vcmask (!%p174_p9), 31744   ;;  %v210_v12 = vld [vmem:[%s1059_s2] sm:$0xf] (!%p174_p9)  ;;  %v867_v17 = vmov (!%p174_p9), 1  }
  0x10   : > { %688 = vmatpush3.msk.msra.mxu0 (!%p174_p9), %vm234_vm0, %v655_v3  ;;  %725 = vmatprep.subr.bf16.mxu1 (!%p174_p9), %v866_v6  ;;  %v729_v13 = vpack.c.bf16 (!%p174_p9), %v218_v9, %v217_v8  ;;  %v219_v14 = vld [vmem:[%s1060_s3 + $0x20] sm:$0xff] (!%p174_p9)  ;;  %v220_v15 = vld [vmem:[%s1060_s3 + $0x28] sm:$0xff] (!%p174_p9)  ;;  %v868_v18 = vmov (!%p174_p9), 3   ;;  %v221_v19 = vld [vmem:[%s1060_s3 + $0x30] sm:$0xff] (!%p174_p9)  ;;  %vm869_vm3 = vmmov (!%p174_p9), 1   ;;  %v226_v31 = vand.u32 (!%p174_p9), 127, %v225_v28 }
  0x11   : > { %692 = vmatprep.subr.mxu0 (!%p174_p9), %v864_v4  ;;  %722 = vmatprep.mubr.msk.f32.mxu1 (!%p174_p9), %vm865_vm1, %v864_v4  ;;  %v732_v16 = vpack.c.bf16 (!%p174_p9), %v220_v15, %v219_v14  ;;  %v222_v20 = vld [vmem:[%s1060_s3 + $0x38] sm:$0xff] (!%p174_p9)  ;;  %v656_v22 = vld [vmem:[%s1059_s2 + $0x8] sm:$0xf] (!%p174_p9)  ;;  %v223_v24 = vld [vmem:[%s1060_s3 + $0x40] sm:$0xff] (!%p174_p9)  ;;  %vm483_vm11 = vcmask (!%p174_p9), 621568   ;;  %s667_s29 = sshll.u32 (!%p174_p9), %s917_s19, 7 }
  0x12   : > { %727 = vmatpush3.bf16.msra.mxu1 (!%p174_p9), %v726_v7  ;;  %v735_v23 = vpack.c.bf16 (!%p174_p9), %v222_v20, %v221_v19  ;;  %v224_v25 = vld [vmem:[%s1060_s3 + $0x48] sm:$0xf] (!%p174_p9)  ;;  %vm739_vm4 = vmpackc.low (!%p174_p9), %vm234_vm0, %vm869_vm3  ;;  %vm561_vm13 = vcmask (!%p174_p9), 261120   ;;  %s1015_s8 = scalar_lea.hbm (!%p174_p9), %s1061_s4, %s667_s29 }
  0x13   : > { %728 = vmatprep.subr.bf16.mxu1 (!%p174_p9), %v866_v6  ;;  %v738_v26 = vpack.c.bf16 (!%p174_p9), %v224_v25, %v223_v24 }
  0x15   : > { %s203_s5 = scalar_select %p202_p10, %s917_s19, 1 }
  0x16   : > { %730 = vmatpush3.bf16.msra.mxu1 %v729_v13  ;;  %s870_s19 = smov [#allocation2]  }
  0x17   : > { %s653_s12 = sshll.u32 %s203_s5, 3  ;;  %731 = vmatprep.subr.bf16.mxu1 %v866_v6  ;;  %s802_s11 = sshll.u32 %s870_s19, 4  ;;  %s803_s11 = int_to_ptr.vmem [resolvable:$false] %s802_s11 }
  0x18   : > { %s209_s20 = scalar_lea.vmem %s1058_s1, %s653_s12  ;;  %s205_s27 = scalar_lea.vmem %s1057_s0, %s653_s12 }
  0x19   : > { %v461_v10 = vld [vmem:[%s209_s20] sm:$0xff]  ;;  %s804_s12 = scalar_lea.vmem %s803_s11, 256 }
  0x1a   : > { %v227_v11 = vld [vmem:[%s205_s27] sm:$0xff]  ;;  %463 = vperm.xlu0 %793, %v461_v10   ;;  %472 = vperm.xlu1 %795, %v461_v10   ;;  %s199_s27 = sand.u32 1, %s852_s16  }
  0x1b   : > { %690 = vmatmul.mubr.msk.f32.vlgmr.msra.gmra.mrb[0].mxu0 %vm230_vm2, %v227_v11  ;;  %v228_v21 = vrot.slane %v227_v11, 7  ;;  %733 = vmatpush3.bf16.msra.mxu1 %v732_v16  ;;  %v229_v27 = vrot.slane %v227_v11, 1  ;;  %s652_s28 = sshll.u32 %s199_s27, 3  ;;  %s564_s9 = scalar_lea.sflag [#allocation3], %s199_s27 }
  0x1c   : > { %693 = vmatpush3.msk.msra.mxu0 %vm234_vm0, %v210_v12  ;;  %694 = vmatprep.mubr.msk.f32.mxu0 %vm865_vm1, %v864_v4  ;;  %s201_s30 = scalar_lea.vmem [#allocation2], %s652_s28 }
  0x1d   : > { %697 = vmatprep.subr.mxu0 %v864_v4  ;;  %734 = vmatprep.subr.bf16.mxu1 %v866_v6  ;;  %s577_s5 = sshll.u32 %s201_s30, 4  ;;  %s1017_s5 = int_to_ptr.vmem [resolvable:$true] %s577_s5 }
  0x1e   : > { %794 = vset.pattern.permute.xlu0 %v867_v17  ;;  %796 = vset.pattern.permute.xlu1 %v868_v18  ;;  %s798_s10 = scalar_lea.vmem %s1017_s5, 128  ;;  %p805_p0 = scmp.lt.s32.totalorder %s1017_s5, %s803_s11 }
  0x1f   : > { %467 = vperm.xlu0 %794, %v461_v10   ;;  %477 = vperm.xlu1 %796, %v461_v10   ;;  %p799_p11 = scmp.ne.s32.totalorder %s1017_s5, %s798_s10  ;;  %p806_p1 = scmp.lt.s32.totalorder %s804_s12, %s798_s10 }
  0x20   : > { %736 = vmatpush3.bf16.msra.mxu1 %v735_v23 }
  0x21   : > { %737 = vmatprep.subr.bf16.mxu1 %v866_v6  ;;  %p800_p12 = pnand %p799_p11, %p934_p5  ;;  %p807_p2 = por %p806_p1, %p805_p0 }
  0x23   : > { %695 = vmatmul.mubr.msk.f32.vlgmr.msra.gmra.mrb[0].mxu0 %vm230_vm2, %v228_v21  ;;  %797 = vset.pattern.permute.xlu0 %v868_v18  ;;  %p801_p13 = pneg %p800_p12 }
  0x24   : > { %698 = vmatpush3.msk.msra.mxu0 %vm234_vm0, %v656_v22  ;;  %699 = vmatprep.mubr.msk.f32.mxu0 %vm865_vm1, %v864_v4 }
  0x25   : > { %740 = vmatpush3.bf16.msk.msra.mxu1 %vm739_vm4, %v738_v26  ;;  %p808_p3 = pnand %p807_p2, %p801_p13 }
  0x2b   : > { %700 = vmatmul.mubr.msk.f32.vlgmr.msra.gmra.mrb[0].mxu0 %vm230_vm2, %v229_v27 }
  0x99   : > { %v464_v29 = vpop.permute.xlu0 %463  ;;  %v473_v30 = vpop.permute.xlu1 %472 }
  0x9a   : > { %vm465_vm5 = vcmp.eq.s32.totalorder %v226_v31, %v464_v29  ;;  %vm474_vm8 = vcmp.eq.s32.totalorder %v226_v31, %v473_v30 }
  0x9e   : > { %v468_v32 = vpop.permute.xlu0 %467  ;;  %v478_v33 = vpop.permute.xlu1 %477 }
  0x9f   : > { %vm469_vm6 = vcmp.eq.s32.totalorder %v226_v31, %v468_v32  ;;  %vm479_vm7 = vcmp.eq.s32.totalorder %v226_v31, %v478_v33 }
  0xa0   : > { %vm470_vm9 = vmor %vm465_vm5, %vm469_vm6 }
  0xa1   : > { %vm475_vm10 = vmor %vm470_vm9, %vm474_vm8 }
  0xa2   : > { %vm480_vm12 = vmor %vm475_vm10, %vm479_vm7 }
  0xa3   : > { %v663_v34 = vsel %vm480_vm12, 1.0, %v864_v4 }
  0xa4   : > { %723 = vmatmul.mubr.msk.f32.vlgmr.msra.gmra.mrb[0].mxu1 %vm483_vm11, %v663_v34 }
  0xfe   : > { %v456_v35 = vpop.f32.mrb[0].mxu0 }
  0xff   : > { %v701_v36 = vpop.f32.mrb[1].mxu0 }
 0x177   : > { %v556_v37 = vpop.f32.mrb[0].mxu1 }
 0x178   : > { %v741_v38 = vadd.f32 %v556_v37, %v456_v35  ;;  %v724_v39 = vpop.f32.mrb[1].mxu1 }
 0x17a   : > { %562 = vst.msk [vmem:[%s201_s30] sm:$0xff] %vm561_vm13, %v741_v38 }
 0x17b   : > { %811 = shalt.err (!%p808_p3)
}
 0x17c   : > { %s812_s13 = scalar_lea.hbm %s1015_s8, 128  ;;  %s816_s22 = scalar_lea.hbm %s1061_s4, 256 }
 0x17d   : > { %p813_p4 = scmp.ne.s32.totalorder %s1015_s8, %s812_s13  ;;  %p817_p9 = scmp.lt.u32.totalorder %s1015_s8, %s1061_s4 }
 0x17e   : > { %p818_p10 = scmp.lt.u32.totalorder %s816_s22, %s812_s13  ;;  %p820_p12 = scmp.lt.u32.totalorder %s812_s13, %s1015_s8 }
 0x17f   : > { %p814_p7 = pnand %p813_p4, %p934_p5 }
 0x180   : > { %p819_p11 = por %p818_p10, %p817_p9 }
 0x181   : > { %p815_p8 = pneg %p814_p7 }
 0x182   : > { %p821_p13 = por %p820_p12, %p819_p11 }
 0x184   : > { %p822_p0 = pnand %p821_p13, %p815_p8 }
 0x186   : > { %825 = shalt.err (!%p822_p0)
}
 0x187   : > { %746 = dma.vmem_to_hbm [thread:$0]  (%p934_p5), %s1017_s5, 128, %s1015_s8, %s564_s9  }
 0x188 PF: > { %p752_p1 = scmp.ge.s32.totalorder %s860_s18, 2  ;;  %s589_s28 = sand.u32 1, %s848_s15  }
 0x189   : > { %s590_s29 = scalar_lea.sflag [#allocation3], %s589_s28 }
 0x18a   : > { %p749_p2 = pnand %p752_p1, %p938_p6 }
 0x18c   : > { %843 = dma.done.wait (!%p749_p2), %s590_s29, 128  }
 0x18d   : > { %845 = vsyncadd (!%p749_p2), %s590_s29, 4294967168  ;;  %p14_p3 = scmp.ge.s32.totalorder %s921_s21, 4   ;;  %s1064_s15 = smov %s852_s16 }
 0x18e   : > { %s1065_s16 = smov %s856_s17  ;;  %s1066_s17 = smov %s932_s24 }
 0x18f   : > { %s1067_s18 = smov %s921_s21  ;;  %16 = sbr.rel (!%p14_p3) target bundleno = 3 (0x3), region = 76 }
 0x196   :  { %595 = vsyncpa [#allocation3], 1 }
 0x197   :  { %597 = vsyncpa [#allocation3 + $0x1], 1 }

</bundles_post_ra>
